<compile_context>
chip_gen: v5e
topology: v5e:2x2
jax: 0.10.0
libtpu: 0.0.40
codegen_flags: <defaults>
</compile_context>

<pallas_src>
import functools

import jax
import jax.numpy as jnp
from jax.experimental import pallas as pl
from jax.experimental.pallas import tpu as pltpu

_PAD_ANCHOR_LABEL = -0x7FFFFFFE     # padded anchor rows (discarded after the kernel)
_PAD_CONTRAST_LABEL = -0x7FFFFFFF   # padded contrast cols (never equals a real label)


def _round_up(x, m):
    return ((x + m - 1) // m) * m


def _supcon_kernel(f_ref, c_ref, lab_ref, clab_ref, bias_ref, out_ref,
                   m_ref, l_ref, s_ref, n_ref, *, needs_col_mask):
    j = pl.program_id(1)

    @pl.when(j == 0)
    def _():
        m_ref[...] = jnp.full(m_ref.shape, -1e30, jnp.float32)
        l_ref[...] = jnp.zeros(l_ref.shape, jnp.float32)
        s_ref[...] = jnp.zeros(s_ref.shape, jnp.float32)
        n_ref[...] = jnp.zeros(n_ref.shape, jnp.float32)

    # MXU matmul with rhs contracted on its feature axis (no transposed copy of c).
    # Operands arrive pre-normalized; anchor rows are already scaled by 1/temperature.
    logits = jax.lax.dot_general(
        f_ref[...], c_ref[...],
        dimension_numbers=(((1,), (1,)), ((), ())),
        preferred_element_type=jnp.float32)                      # (TM, TN) f32

    if needs_col_mask:
        # Bias row is 0 on real columns, -1e30 on padded columns (only the last
        # contrast tile has any); exp(-1e30 - m_new) underflows to exactly 0.
        logits_for_max = logits + bias_ref[...]
    else:
        logits_for_max = logits

    # Positive-pair mask from int32 label equality.  Padded contrast columns carry a
    # sentinel label that never equals a real label or the anchor-pad sentinel, so no
    # extra column-validity multiply is needed here.
    mask = (lab_ref[...] == clab_ref[...]).astype(jnp.float32)   # (TM, TN)

    # Online log-sum-exp update.
    m_prev = m_ref[...]
    m_new = jnp.maximum(m_prev, jnp.max(logits_for_max, axis=1, keepdims=True))
    p = jnp.exp(logits_for_max - m_new)
    l_ref[...] = (l_ref[...] * jnp.exp(m_prev - m_new)
                  + jnp.sum(p, axis=1, keepdims=True))
    m_ref[...] = m_new

    # Positive accumulators; raw logits are bounded by 1/temperature, safe un-shifted.
    s_ref[...] += jnp.sum(mask * logits, axis=1, keepdims=True)
    n_ref[...] += jnp.sum(mask, axis=1, keepdims=True)

    @pl.when(j == pl.num_programs(1) - 1)
    def _():
        lse = m_ref[...] + jnp.log(l_ref[...])
        # loss_row = lse - sum(mask*logits)/sum(mask).  Rows with zero positives give
        # NaN (0/0) exactly like the PyTorch reference; padded rows are sliced off in
        # the wrapper before the mean.
        out_ref[...] = lse - s_ref[...] / n_ref[...]


def improved_supcon_loss(features, contrast_feature, labels=None, contrast_labels=None,
                         temperature=0.07, matmul_dtype=jnp.bfloat16, tm=None, tn=None):
    bsz, dim = features.shape
    cbsz, cdim = contrast_feature.shape
    assert dim == cdim, "feature dims must match"

    if labels is not None and contrast_labels is not None:
        lab = jnp.asarray(labels).reshape(-1).astype(jnp.int32)
        clab = jnp.asarray(contrast_labels).reshape(-1).astype(jnp.int32)
    else:
        # Unsupervised (SimCLR-style) path: mask = eye(bsz) encoded as row-index labels.
        assert bsz == cbsz, "eye mask requires bsz == contrast_bsz"
        lab = jnp.arange(bsz, dtype=jnp.int32)
        clab = jnp.arange(cbsz, dtype=jnp.int32)

    # Normalize once here (f32), fold 1/temperature into the anchor rows, then store in
    # the MXU operand dtype so the kernel never re-normalizes or re-casts tiles.  This
    # is a redundant-work/DMA elimination, not a per-op wrapper pre-scale.
    inv_temp = jnp.float32(1.0 / temperature)
    f32 = features.astype(jnp.float32)
    c32 = contrast_feature.astype(jnp.float32)
    f_n = f32 * (jax.lax.rsqrt(
        jnp.maximum(jnp.sum(f32 * f32, axis=1, keepdims=True), 1e-24)) * inv_temp)
    c_n = c32 * jax.lax.rsqrt(
        jnp.maximum(jnp.sum(c32 * c32, axis=1, keepdims=True), 1e-24))

    # TPU-friendly padded shapes and VMEM-aware tile sizes.
    d_p = _round_up(dim, 128)
    op_bytes = jnp.dtype(matmul_dtype).itemsize
    try:
        vmem_cap = int(pltpu.get_tpu_info().vmem_capacity_bytes)
    except Exception:
        vmem_cap = 64 * 1024 * 1024          # conservative (v7x-sized) fallback
    budget = int(vmem_cap * 0.55)            # ~35 MiB on v7x, ~70 MiB on v5e/v6e

    def _usage(tm_, tn_):
        operands = 2 * (tm_ * d_p + tn_ * d_p) * op_bytes     # double-buffered tiles
        intermediates = 4 * tm_ * tn_ * 4                     # logits/biased/p/mask f32
        accum = 5 * tm_ * 4 + 2 * 2 * tn_ * 4                 # (tm,1) scratch + labels/bias
        return operands + intermediates + accum

    if tn is None:
        tn = min(512, _round_up(cbsz, 128))
    else:
        tn = max(128, _round_up(tn, 128))
    if tm is None:
        tm = min(2048, _round_up(bsz, 8))
        if bsz >= 256:
            # Keep >= 2 row tiles so the "parallel" axis can shard across the two
            # TensorCores of a v7x chip.
            tm = min(tm, max(128, _round_up(_round_up(bsz, 8) // 2, 8)))
    else:
        tm = max(8, _round_up(tm, 8))
    # Fit the budget: shrink tn first (does not change total contrast HBM traffic),
    # then tm (which does).
    while tn > 128 and _usage(tm, tn) > budget:
        tn = max(128, _round_up(tn // 2, 128))
    while tm > 8 and _usage(tm, tn) > budget:
        tm = max(8, _round_up(tm // 2, 8))

    bsz_p = _round_up(bsz, tm)
    cbsz_p = _round_up(cbsz, tn)
    needs_col_mask = cbsz_p != cbsz

    f_p = f_n.astype(matmul_dtype)
    if (bsz_p, d_p) != (bsz, dim):
        f_p = jnp.zeros((bsz_p, d_p), matmul_dtype).at[:bsz, :dim].set(f_p)
    c_p = c_n.astype(matmul_dtype)
    if (cbsz_p, d_p) != (cbsz, dim):
        c_p = jnp.zeros((cbsz_p, d_p), matmul_dtype).at[:cbsz, :dim].set(c_p)

    # Sentinel labels for padding; padded anchor rows are discarded after the kernel.
    lab_p = jnp.full((bsz_p, 1), _PAD_ANCHOR_LABEL, jnp.int32).at[:bsz, 0].set(lab)
    clab_p = jnp.full((1, cbsz_p), _PAD_CONTRAST_LABEL, jnp.int32).at[0, :cbsz].set(clab)

    # Additive column bias: 0 on real columns, -1e30 on padded columns.
    bias = jnp.zeros((1, cbsz_p), jnp.float32)
    if needs_col_mask:
        bias = bias.at[0, cbsz:].set(-1e30)

    grid = (bsz_p // tm, cbsz_p // tn)
    kernel = functools.partial(_supcon_kernel, needs_col_mask=needs_col_mask)

    cost = pl.CostEstimate(
        flops=2 * bsz_p * cbsz_p * d_p,
        transcendentals=bsz_p * cbsz_p,
        bytes_accessed=(bsz_p * d_p * op_bytes                    # anchors, read once
                        + grid[0] * cbsz_p * d_p * op_bytes       # contrast re-streams
                        + bsz_p * 4))

    per_row = pl.pallas_call(
        kernel,
        out_shape=jax.ShapeDtypeStruct((bsz_p, 1), jnp.float32),
        grid_spec=pltpu.PrefetchScalarGridSpec(
            num_scalar_prefetch=0,
            grid=grid,
            in_specs=[
                pl.BlockSpec((tm, d_p), lambda i, j: (i, 0)),   # anchor rows (pre-norm)
                pl.BlockSpec((tn, d_p), lambda i, j: (j, 0)),   # contrast rows (pre-norm)
                pl.BlockSpec((tm, 1), lambda i, j: (i, 0)),     # anchor labels (int32)
                pl.BlockSpec((1, tn), lambda i, j: (0, j)),     # contrast labels (int32)
                pl.BlockSpec((1, tn), lambda i, j: (0, j)),     # column pad bias (f32)
            ],
            out_specs=pl.BlockSpec((tm, 1), lambda i, j: (i, 0)),
            scratch_shapes=[pltpu.VMEM((tm, 1), jnp.float32)] * 4,  # m, l, s, n
        ),
        compiler_params=pltpu.CompilerParams(
            dimension_semantics=("parallel", "arbitrary"),
            vmem_limit_bytes=int(min(vmem_cap - (8 << 20), budget + (16 << 20)))),
        cost_estimate=cost,
    )(f_p, c_p, lab_p, clab_p, bias)

    return jnp.mean(per_row[:bsz, 0])


def _reference_loss(features, contrast_feature, labels, contrast_labels,
                    temperature=0.07):
    # Pure-JAX reference mirroring the PyTorch module (f32 throughout).
    f = features / jnp.maximum(
        jnp.linalg.norm(features, axis=1, keepdims=True), 1e-12)
    c = contrast_feature / jnp.maximum(
        jnp.linalg.norm(contrast_feature, axis=1, keepdims=True), 1e-12)
    logits = (f @ c.T) / temperature
    logits = logits - jnp.max(logits, axis=1, keepdims=True)
    log_prob = logits - jnp.log(jnp.sum(jnp.exp(logits), axis=1, keepdims=True))
    mask = (labels.reshape(-1, 1) == contrast_labels.reshape(1, -1)).astype(jnp.float32)
    mean_log_prob_pos = jnp.sum(mask * log_prob, axis=1) / jnp.sum(mask, axis=1)
    return jnp.mean(-mean_log_prob_pos)


if __name__ == "__main__":
    key = jax.random.PRNGKey(0)
    k1, k2, k3 = jax.random.split(key, 3)

    bsz, contrast_bsz, feature_dim = 8, 8, 32
    features = jax.random.normal(k1, (bsz, feature_dim), dtype=jnp.float32)
    contrast_feature = jax.random.normal(k2, (contrast_bsz, feature_dim),
                                         dtype=jnp.float32)
    labels = jax.random.randint(k3, (bsz,), 0, 4, dtype=jnp.int32)
    # Every class 0..3 appears among contrast labels -> every anchor has >= 1 positive
    # (avoids the intentional 0/0 NaN semantics of zero-positive rows in this test).
    contrast_labels = (jnp.arange(contrast_bsz) % 4).astype(jnp.int32)

    # 1) Supervised path, f32 matmul (tight tolerance vs f32 reference).
    loss_f32 = improved_supcon_loss(features, contrast_feature, labels,
                                    contrast_labels, matmul_dtype=jnp.float32)
    jax.block_until_ready(loss_f32)
    ref_sup = _reference_loss(features, contrast_feature, labels, contrast_labels)
    assert jnp.allclose(loss_f32, ref_sup, atol=1e-4, rtol=1e-4), (loss_f32, ref_sup)

    # 2) Supervised path, bf16 MXU operands (default; loose tolerance vs f32 reference).
    loss_bf16 = improved_supcon_loss(features, contrast_feature, labels, contrast_labels)
    jax.block_until_ready(loss_bf16)
    assert jnp.allclose(loss_bf16, ref_sup, atol=5e-2, rtol=5e-2), (loss_bf16, ref_sup)

    # 3) Unsupervised (eye-mask) path.
    loss_unsup = improved_supcon_loss(features, contrast_feature,
                                      matmul_dtype=jnp.float32)
    jax.block_until_ready(loss_unsup)
    ref_unsup = _reference_loss(features, contrast_feature,
                                jnp.arange(bsz), jnp.arange(contrast_bsz))
    assert jnp.allclose(loss_unsup, ref_unsup, atol=1e-4, rtol=1e-4), (loss_unsup, ref_unsup)

    # 4) Multi-tile grid (forced small tiles) + ragged padding on both axes
    #    (exercises the column-pad bias path and the online LSE across contrast tiles).
    k5, k6, k7 = jax.random.split(jax.random.PRNGKey(1), 3)
    b2, cb2, d2 = 24, 200, 96
    feats2 = jax.random.normal(k5, (b2, d2), dtype=jnp.float32)
    cfeats2 = jax.random.normal(k6, (cb2, d2), dtype=jnp.float32)
    labs2 = jax.random.randint(k7, (b2,), 0, 5, dtype=jnp.int32)
    clabs2 = (jnp.arange(cb2) % 5).astype(jnp.int32)   # every class has positives
    loss2 = improved_supcon_loss(feats2, cfeats2, labs2, clabs2,
                                 matmul_dtype=jnp.float32, tm=8, tn=128)
    jax.block_until_ready(loss2)
    ref2 = _reference_loss(feats2, cfeats2, labs2, clabs2)
    assert jnp.allclose(loss2, ref2, atol=1e-4, rtol=1e-4), (loss2, ref2)

    print("KERNEL_OK")
</pallas_src>

<mosaic_0001>
module attributes {stable_mosaic.version = 11 : i64} {
  func.func @_supcon_kernel(%arg0: i32, %arg1: i32, %arg2: memref<8x128xf32, #tpu.memory_space<vmem>>, %arg3: memref<128x128xf32, #tpu.memory_space<vmem>>, %arg4: memref<8x1xi32, #tpu.memory_space<vmem>>, %arg5: memref<1x128xi32, #tpu.memory_space<vmem>>, %arg6: memref<1x128xf32, #tpu.memory_space<vmem>>, %arg7: memref<8x1xf32, #tpu.memory_space<vmem>>, %arg8: memref<8x1xf32, #tpu.memory_space<vmem>>, %arg9: memref<8x1xf32, #tpu.memory_space<vmem>>, %arg10: memref<8x1xf32, #tpu.memory_space<vmem>>, %arg11: memref<8x1xf32, #tpu.memory_space<vmem>>) attributes {dimension_semantics = [#tpu.dimension_semantics<parallel>, #tpu.dimension_semantics<arbitrary>], iteration_bounds = array<i64: 1, 1>, scalar_prefetch = 0 : i64, scratch_operands = 4 : i64, tpu.core_type = #tpu.core_type<tc>, window_params = [{transform_indices = @transform_0, window_bounds = array<i64: 8, 128>}, {transform_indices = @transform_1, window_bounds = array<i64: 128, 128>}, {transform_indices = @transform_2, window_bounds = array<i64: 8, 1>}, {transform_indices = @transform_3, window_bounds = array<i64: 1, 128>}, {transform_indices = @transform_4, window_bounds = array<i64: 1, 128>}, {transform_indices = @transform_5, window_bounds = array<i64: 8, 1>}]} {
    %c0_i32 = arith.constant 0 : i32
    %0 = arith.cmpi eq, %arg1, %c0_i32 : i32
    %1 = arith.extui %0 : i1 to i32
    %c0_i32_0 = arith.constant 0 : i32
    %2 = arith.cmpi ne, %1, %c0_i32_0 : i32
    scf.if %2 {
      %cst_32 = arith.constant -1.000000e+30 : f32
      %46 = vector.broadcast %cst_32 : f32 to vector<8x1xf32>
      %c0_33 = arith.constant 0 : index
      %c0_34 = arith.constant 0 : index
      %47 = vector.load %arg8[%c0_33, %c0_34] : memref<8x1xf32, #tpu.memory_space<vmem>>, vector<8x1xf32>
      tpu.vector_store %arg8[%c0_33, %c0_34], %46 {strides = array<i32>} : memref<8x1xf32, #tpu.memory_space<vmem>>, vector<8x1xf32>,
      %cst_35 = arith.constant 0.000000e+00 : f32
      %48 = vector.broadcast %cst_35 : f32 to vector<8x1xf32>
      %c0_36 = arith.constant 0 : index
      %c0_37 = arith.constant 0 : index
      %49 = vector.load %arg9[%c0_36, %c0_37] : memref<8x1xf32, #tpu.memory_space<vmem>>, vector<8x1xf32>
      tpu.vector_store %arg9[%c0_36, %c0_37], %48 {strides = array<i32>} : memref<8x1xf32, #tpu.memory_space<vmem>>, vector<8x1xf32>,
      %cst_38 = arith.constant 0.000000e+00 : f32
      %50 = vector.broadcast %cst_38 : f32 to vector<8x1xf32>
      %c0_39 = arith.constant 0 : index
      %c0_40 = arith.constant 0 : index
      %51 = vector.load %arg10[%c0_39, %c0_40] : memref<8x1xf32, #tpu.memory_space<vmem>>, vector<8x1xf32>
      tpu.vector_store %arg10[%c0_39, %c0_40], %50 {strides = array<i32>} : memref<8x1xf32, #tpu.memory_space<vmem>>, vector<8x1xf32>,
      %cst_41 = arith.constant 0.000000e+00 : f32
      %52 = vector.broadcast %cst_41 : f32 to vector<8x1xf32>
      %c0_42 = arith.constant 0 : index
      %c0_43 = arith.constant 0 : index
      %53 = vector.load %arg11[%c0_42, %c0_43] : memref<8x1xf32, #tpu.memory_space<vmem>>, vector<8x1xf32>
      tpu.vector_store %arg11[%c0_42, %c0_43], %52 {strides = array<i32>} : memref<8x1xf32, #tpu.memory_space<vmem>>, vector<8x1xf32>,
    } else {
    }
    %c0 = arith.constant 0 : index
    %c0_1 = arith.constant 0 : index
    %3 = vector.load %arg2[%c0, %c0_1] : memref<8x128xf32, #tpu.memory_space<vmem>>, vector<8x128xf32>
    %c0_2 = arith.constant 0 : index
    %c0_3 = arith.constant 0 : index
    %4 = vector.load %arg3[%c0_2, %c0_3] : memref<128x128xf32, #tpu.memory_space<vmem>>, vector<128x128xf32>
    %cst = arith.constant dense<0.000000e+00> : vector<8x128xf32>
    %5 = tpu.matmul %3, %4, %cst {dimension_numbers = #tpu.dot_dimension_numbers<[1], [1], [0], [0], [0, 0, 1, 0], [], []>} : vector<8x128xf32>, vector<128x128xf32>, vector<8x128xf32> -> vector<8x128xf32>
    %c0_4 = arith.constant 0 : index
    %c0_5 = arith.constant 0 : index
    %6 = vector.load %arg6[%c0_4, %c0_5] : memref<1x128xf32, #tpu.memory_space<vmem>>, vector<1x128xf32>
    %7 = vector.broadcast %6 : vector<1x128xf32> to vector<8x128xf32>
    %8 = arith.addf %5, %7 : vector<8x128xf32>
    %c0_6 = arith.constant 0 : index
    %c0_7 = arith.constant 0 : index
    %9 = vector.load %arg4[%c0_6, %c0_7] : memref<8x1xi32, #tpu.memory_space<vmem>>, vector<8x1xi32>
    %c0_8 = arith.constant 0 : index
    %c0_9 = arith.constant 0 : index
    %10 = vector.load %arg5[%c0_8, %c0_9] : memref<1x128xi32, #tpu.memory_space<vmem>>, vector<1x128xi32>
    %11 = vector.broadcast %9 : vector<8x1xi32> to vector<8x128xi32>
    %12 = vector.broadcast %10 : vector<1x128xi32> to vector<8x128xi32>
    %13 = arith.cmpi eq, %11, %12 : vector<8x128xi32>
    %14 = arith.extui %13 : vector<8x128xi1> to vector<8x128xi32>
    %15 = arith.sitofp %14 : vector<8x128xi32> to vector<8x128xf32>
    %c0_10 = arith.constant 0 : index
    %c0_11 = arith.constant 0 : index
    %16 = vector.load %arg8[%c0_10, %c0_11] : memref<8x1xf32, #tpu.memory_space<vmem>>, vector<8x1xf32>
    %cst_12 = arith.constant dense<0xFF800000> : vector<8xf32>
    %17 = vector.multi_reduction <maximumf>, %8, %cst_12 [1] : vector<8x128xf32> to vector<8xf32>
    %18 = vector.shape_cast %17 : vector<8xf32> to vector<8x1xf32>
    %19 = arith.maximumf %16, %18 : vector<8x1xf32>
    %20 = vector.broadcast %19 : vector<8x1xf32> to vector<8x128xf32>
    %21 = arith.subf %8, %20 : vector<8x128xf32>
    %22 = math.exp %21 : vector<8x128xf32>
    %c0_13 = arith.constant 0 : index
    %c0_14 = arith.constant 0 : index
    %23 = vector.load %arg9[%c0_13, %c0_14] : memref<8x1xf32, #tpu.memory_space<vmem>>, vector<8x1xf32>
    %24 = arith.subf %16, %19 : vector<8x1xf32>
    %25 = math.exp %24 : vector<8x1xf32>
    %26 = arith.mulf %23, %25 : vector<8x1xf32>
    %cst_15 = arith.constant dense<0.000000e+00> : vector<8xf32>
    %27 = vector.multi_reduction <add>, %22, %cst_15 [1] : vector<8x128xf32> to vector<8xf32>
    %28 = vector.shape_cast %27 : vector<8xf32> to vector<8x1xf32>
    %29 = arith.addf %26, %28 : vector<8x1xf32>
    %c0_16 = arith.constant 0 : index
    %c0_17 = arith.constant 0 : index
    %30 = vector.load %arg9[%c0_16, %c0_17] : memref<8x1xf32, #tpu.memory_space<vmem>>, vector<8x1xf32>
    tpu.vector_store %arg9[%c0_16, %c0_17], %29 {strides = array<i32>} : memref<8x1xf32, #tpu.memory_space<vmem>>, vector<8x1xf32>,
    %c0_18 = arith.constant 0 : index
    %c0_19 = arith.constant 0 : index
    %31 = vector.load %arg8[%c0_18, %c0_19] : memref<8x1xf32, #tpu.memory_space<vmem>>, vector<8x1xf32>
    tpu.vector_store %arg8[%c0_18, %c0_19], %19 {strides = array<i32>} : memref<8x1xf32, #tpu.memory_space<vmem>>, vector<8x1xf32>,
    %c0_20 = arith.constant 0 : index
    %c0_21 = arith.constant 0 : index
    %32 = vector.load %arg10[%c0_20, %c0_21] : memref<8x1xf32, #tpu.memory_space<vmem>>, vector<8x1xf32>
    %33 = arith.mulf %15, %5 : vector<8x128xf32>
    %cst_22 = arith.constant dense<0.000000e+00> : vector<8xf32>
    %34 = vector.multi_reduction <add>, %33, %cst_22 [1] : vector<8x128xf32> to vector<8xf32>
    %35 = vector.shape_cast %34 : vector<8xf32> to vector<8x1xf32>
    %36 = arith.addf %32, %35 : vector<8x1xf32>
    %c0_23 = arith.constant 0 : index
    %c0_24 = arith.constant 0 : index
    %37 = vector.load %arg10[%c0_23, %c0_24] : memref<8x1xf32, #tpu.memory_space<vmem>>, vector<8x1xf32>
    tpu.vector_store %arg10[%c0_23, %c0_24], %36 {strides = array<i32>} : memref<8x1xf32, #tpu.memory_space<vmem>>, vector<8x1xf32>,
    %c0_25 = arith.constant 0 : index
    %c0_26 = arith.constant 0 : index
    %38 = vector.load %arg11[%c0_25, %c0_26] : memref<8x1xf32, #tpu.memory_space<vmem>>, vector<8x1xf32>
    %cst_27 = arith.constant dense<0.000000e+00> : vector<8xf32>
    %39 = vector.multi_reduction <add>, %15, %cst_27 [1] : vector<8x128xf32> to vector<8xf32>
    %40 = vector.shape_cast %39 : vector<8xf32> to vector<8x1xf32>
    %41 = arith.addf %38, %40 : vector<8x1xf32>
    %c0_28 = arith.constant 0 : index
    %c0_29 = arith.constant 0 : index
    %42 = vector.load %arg11[%c0_28, %c0_29] : memref<8x1xf32, #tpu.memory_space<vmem>>, vector<8x1xf32>
    tpu.vector_store %arg11[%c0_28, %c0_29], %41 {strides = array<i32>} : memref<8x1xf32, #tpu.memory_space<vmem>>, vector<8x1xf32>,
    %c0_i32_30 = arith.constant 0 : i32
    %43 = arith.cmpi eq, %arg1, %c0_i32_30 : i32
    %44 = arith.extui %43 : i1 to i32
    %c0_i32_31 = arith.constant 0 : i32
    %45 = arith.cmpi ne, %44, %c0_i32_31 : i32
    scf.if %45 {
      %c0_32 = arith.constant 0 : index
      %c0_33 = arith.constant 0 : index
      %46 = vector.load %arg8[%c0_32, %c0_33] : memref<8x1xf32, #tpu.memory_space<vmem>>, vector<8x1xf32>
      %c0_34 = arith.constant 0 : index
      %c0_35 = arith.constant 0 : index
      %47 = vector.load %arg9[%c0_34, %c0_35] : memref<8x1xf32, #tpu.memory_space<vmem>>, vector<8x1xf32>
      %48 = math.log %47 : vector<8x1xf32>
      %49 = arith.addf %46, %48 : vector<8x1xf32>
      %c0_36 = arith.constant 0 : index
      %c0_37 = arith.constant 0 : index
      %50 = vector.load %arg10[%c0_36, %c0_37] : memref<8x1xf32, #tpu.memory_space<vmem>>, vector<8x1xf32>
      %c0_38 = arith.constant 0 : index
      %c0_39 = arith.constant 0 : index
      %51 = vector.load %arg11[%c0_38, %c0_39] : memref<8x1xf32, #tpu.memory_space<vmem>>, vector<8x1xf32>
      %52 = arith.divf %50, %51 : vector<8x1xf32>
      %53 = arith.subf %49, %52 : vector<8x1xf32>
      %c0_40 = arith.constant 0 : index
      %c0_41 = arith.constant 0 : index
      %54 = vector.load %arg7[%c0_40, %c0_41] : memref<8x1xf32, #tpu.memory_space<vmem>>, vector<8x1xf32>
      tpu.vector_store %arg7[%c0_40, %c0_41], %53 {strides = array<i32>} : memref<8x1xf32, #tpu.memory_space<vmem>>, vector<8x1xf32>,
    } else {
    }
    return
  }
  func.func @transform_0(%arg0: i32, %arg1: i32) -> (i32, i32) {
    %c0_i32 = arith.constant 0 : i32
    %c0_i32_0 = arith.constant 0 : i32
    return %arg0, %c0_i32 : i32, i32
  }
  func.func @transform_1(%arg0: i32, %arg1: i32) -> (i32, i32) {
    %c0_i32 = arith.constant 0 : i32
    %c0_i32_0 = arith.constant 0 : i32
    return %arg1, %c0_i32 : i32, i32
  }
  func.func @transform_2(%arg0: i32, %arg1: i32) -> (i32, i32) {
    %c0_i32 = arith.constant 0 : i32
    %c0_i32_0 = arith.constant 0 : i32
    return %arg0, %c0_i32 : i32, i32
  }
  func.func @transform_3(%arg0: i32, %arg1: i32) -> (i32, i32) {
    %c0_i32 = arith.constant 0 : i32
    %c0_i32_0 = arith.constant 0 : i32
    return %c0_i32, %arg1 : i32, i32
  }
  func.func @transform_4(%arg0: i32, %arg1: i32) -> (i32, i32) {
    %c0_i32 = arith.constant 0 : i32
    %c0_i32_0 = arith.constant 0 : i32
    return %c0_i32, %arg1 : i32, i32
  }
  func.func @transform_5(%arg0: i32, %arg1: i32) -> (i32, i32) {
    %c0_i32 = arith.constant 0 : i32
    %c0_i32_0 = arith.constant 0 : i32
    return %arg0, %c0_i32 : i32, i32
  }
}

</mosaic_0001>

<bundles_post_ra>
// kernel: tpu_custom_call.1
= control target key start
LH: loop header
LB: loop body
LE: loop exit
PB: predicated region body
PF: predicated region fallthrough
CT: control target
= control target key end

     0   :  { %10 = vsyncpa [#allocation7], 0  ;;  %s207_s21 = smov [#allocation6]   ;;  %s208_s23 = smov 128   ;;  %s270_s0 = inlined_call_operand.vmem [shape: f32[8,128], index: 0, kind: input, shape index: {}]   ;;  %s271_s1 = inlined_call_operand.hbm [shape: f32[128,128], index: 1, kind: input, shape index: {}]   ;;  %s272_s2 = inlined_call_operand.vmem [shape: s32[8,1], index: 2, kind: input, shape index: {}]   ;;  %s273_s3 = inlined_call_operand.vmem [shape: s32[1,128], index: 3, kind: input, shape index: {}]   ;;  %s274_s4 = inlined_call_operand.vmem [shape: f32[1,128], index: 4, kind: input, shape index: {}]   ;;  %s275_s5 = inlined_call_operand.vmem [shape: f32[8,1], index: 5, kind: output, shape index: {}]  }
   0x1   :  { %s17_s20 = sshll.u32 %s271_s1, 4  ;;  %s19_s22 = sshll.u32 %s207_s21, 4  ;;  %s18_s20 = int_to_ptr.hbm [resolvable:$true] %s17_s20  ;;  %s20_s22 = int_to_ptr.vmem [resolvable:$true] %s19_s22 }
   0x2   :  { %s209_s24 = smov 8  }
   0x3   :  { %25 = dma.hbm_to_vmem [thread:$0]  %s18_s20, 2048, %s20_s22, [#allocation7], %s208_s23, %s208_s23, %s209_s24  }
   0x4   :  { %205 = dma.done.wait [#allocation7], 2048  }
   0x5   :  { %206 = vsyncadd [#allocation7], 4294965248  ;;  %v61_v0 = vld [vmem:[#allocation6 + $0x78] sm:$0xff]  ;;  %v60_v1 = vld [vmem:[#allocation6 + $0x70] sm:$0xff]  ;;  %v210_v10 = vmov 0   ;;  %vm40_vm0 = vcmask 7168  }
   0x6   :  { %62 = vmatpush.xpose.msra.mxu0 %v61_v0  ;;  %v59_v2 = vld [vmem:[#allocation6 + $0x68] sm:$0xff]  ;;  %v58_v3 = vld [vmem:[#allocation6 + $0x60] sm:$0xff]  ;;  %v57_v4 = vld [vmem:[#allocation6 + $0x58] sm:$0xff]  ;;  %170 = vset.pattern.permute.xlu1 %v210_v10  ;;  %v211_v19 = vmov 0.0   ;;  %v212_v23 = vmov -1e+30  }
   0x7   :  { %v56_v5 = vld [vmem:[#allocation6 + $0x50] sm:$0xff]  ;;  %v55_v6 = vld [vmem:[#allocation6 + $0x48] sm:$0xff]  ;;  %v54_v7 = vld [vmem:[#allocation6 + $0x40] sm:$0xff]  ;;  %169 = vset.pattern.permute.xlu0 %v210_v10  ;;  %42 = vst.msk [vmem:[#allocation3] sm:$0xff] %vm40_vm0, %v211_v19 }
   0x8   :  { %v53_v8 = vld [vmem:[#allocation6 + $0x38] sm:$0xff]  ;;  %v87_v9 = vld [vmem:[%s272_s2] sm:$0xff]  ;;  %v52_v11 = vld [vmem:[#allocation6 + $0x30] sm:$0xff]  ;;  %43 = vst.msk [vmem:[#allocation4] sm:$0xff] %vm40_vm0, %v211_v19 }
   0x9   :  { %90 = vperm.xlu1 %170, %v87_v9   ;;  %v51_v12 = vld [vmem:[#allocation6 + $0x28] sm:$0xff]  ;;  %v50_v13 = vld [vmem:[#allocation6 + $0x20] sm:$0xff]  ;;  %v49_v14 = vld [vmem:[#allocation6 + $0x18] sm:$0xff]  ;;  %44 = vst.msk [vmem:[#allocation5] sm:$0xff] %vm40_vm0, %v211_v19 }
   0xa   :  { %63 = vmatpush.xpose.msra.mxu0 %v60_v1  ;;  %v48_v15 = vld [vmem:[#allocation6 + $0x10] sm:$0xff]  ;;  %v47_v16 = vld [vmem:[#allocation6 + $0x8] sm:$0xff]  ;;  %v46_v17 = vld [vmem:[#allocation6] sm:$0xff]  ;;  %41 = vst.msk [vmem:[#allocation2] sm:$0xff] %vm40_vm0, %v212_v23 }
   0xb   :  { %v45_v18 = vld [vmem:[%s270_s0] sm:$0xff] }
   0xc   :  { %v171_v20 = vld [vmem:[%s273_s3] ss:$0 sm:$0xff] }
   0xd   :  { %v172_v24 = vld [vmem:[%s274_s4] ss:$0 sm:$0xff] }
   0xe   :  { %64 = vmatpush.xpose.msra.mxu0 %v59_v2  ;;  %v108_v43 = vld [vmem:[#allocation3] sm:$0xff] }
   0xf   :  { %v119_v49 = vld [vmem:[#allocation4] sm:$0xff] }
  0x10   :  { %v125_v33 = vld [vmem:[#allocation5] sm:$0xff] }
  0x11   :  { %v96_v28 = vld [vmem:[#allocation2] sm:$0xff] }
  0x12   :  { %65 = vmatpush.xpose.msra.mxu0 %v58_v3 }
  0x16   :  { %66 = vmatpush.xpose.msra.mxu0 %v57_v4 }
  0x1a   :  { %67 = vmatpush.xpose.msra.mxu0 %v56_v5 }
  0x1e   :  { %68 = vmatpush.xpose.msra.mxu0 %v55_v6 }
  0x22   :  { %69 = vmatpush.xpose.msra.mxu0 %v54_v7 }
  0x26   :  { %70 = vmatpush.xpose.msra.mxu0 %v53_v8 }
  0x2a   :  { %71 = vmatpush.xpose.msra.mxu0 %v52_v11 }
  0x2e   :  { %72 = vmatpush.xpose.msra.mxu0 %v51_v12 }
  0x32   :  { %73 = vmatpush.xpose.msra.mxu0 %v50_v13 }
  0x36   :  { %74 = vmatpush.xpose.msra.mxu0 %v49_v14 }
  0x3a   :  { %75 = vmatpush.xpose.msra.mxu0 %v48_v15 }
  0x3e   :  { %76 = vmatpush.xpose.msra.mxu0 %v47_v16 }
  0x42   :  { %77 = vmatpush.xpose.msra.mxu0 %v46_v17 }
  0x45   :  { %78 = vmatmul.f32.vlgmr.msra.gmra.mxu0 %v45_v18 }
  0x7b   :  { %v91_v21 = vpop.permute.xlu1 %90 }
  0x7c   :  { %vm93_vm1 = vcmp.eq.s32.totalorder %v91_v21, %v171_v20 }
  0x7d   :  { %v162_v22 = vsel %vm93_vm1, 1.0, %v211_v19 }
  0x7e   :  { %126 = vadd.xlane.f32.xlu1 %v162_v22 }
  0xc2   :  { %v79_v25 = vpop.f32.mrf.mxu0 }
  0xc3   :  { %v86_v26 = vadd.f32 %v172_v24, %v79_v25  ;;  %v120_v27 = vmul.f32 %v162_v22, %v79_v25 }
  0xc5   :  { %97 = vmax.xlane.f32.xlu0 %v86_v26 }
  0xf1   :  { %v127_v32 = vpop.xlane.xlu1 %126 }
  0xf2   :  { %v128_v34 = vadd.f32 %v127_v32, %v125_v33 }
  0xf4   :  { %129 = vst.msk [vmem:[#allocation5] sm:$0xff] %vm40_vm0, %v128_v34 }
  0xfb   :  { %v139_v40 = vld [vmem:[#allocation5] sm:$0xff] }
  0xfc   :  { %vm145_vm2 = vweird.f32 %v139_v40  ;;  %v151_v53 = vand.u32 2147483648, %v139_v40  ;;  %v149_v56 = vand.u32 2147483647, %v139_v40 }
  0xfe   :  { %v152_v57 = vor.u32 1.1754944e-38, %v151_v53  ;;  %vm150_vm5 = vcmp.eq.f32.partialorder %v149_v56, 8.507059e+37 }
 0x138   :  { %v98_v29 = vpop.xlane.xlu0 %97 }
 0x139   :  { %v99_v30 = vmax.f32 %v96_v28, %v98_v29 }
 0x13b   :  { %v109_v31 = vsub.f32 %v96_v28, %v99_v30  ;;  %118 = vst.msk [vmem:[#allocation2] sm:$0xff] %vm40_vm0, %v99_v30  ;;  %102 = vperm.xlu0 %169, %v99_v30  }
 0x13d   :  { %v110_v39 = vmul.f32 1.442695, %v109_v31 }
 0x142   :  { %v133_v63 = vld [vmem:[#allocation2] sm:$0xff] }
 0x1ad   :  { %v103_v35 = vpop.permute.xlu0 %102 }
 0x1ae   :  { %v105_v36 = vsub.f32 %v86_v26, %v103_v35 }
 0x1b0   :  { %v106_v37 = vmul.f32 1.442695, %v105_v36 }
 0x1b2   :  { %173 = vpow2.f32 %v106_v37 }
 0x1b3   :  { %175 = vpow2.f32 %v110_v39 }
 0x1b4   :  { %177 = vrcp.f32 %v139_v40 }
 0x1b8   :  { %v174_v38 = vpop.eup %173 }
 0x1b9   :  { %113 = vadd.xlane.f32.xlu2 %v174_v38  ;;  %v176_v41 = vpop.eup %175 }
 0x1ba   :  { %v178_v42 = vpop.eup %177  ;;  %v112_v45 = vmul.f32 %v176_v41, %v108_v43 }
 0x1bb   :  { %v141_v44 = vmul.f32 %v178_v42, %v139_v40  ;;  %vm146_vm3 = vweird.f32 %v178_v42 }
 0x1bc   :  { %vm147_vm4 = vmor %vm145_vm2, %vm146_vm3 }
 0x1bd   :  { %v142_v48 = vsub.f32 1.0, %v141_v44 }
 0x1bf   :  { %v143_v50 = vmul.f32 %v178_v42, %v142_v48 }
 0x1c1   :  { %121 = vadd.xlane.f32.xlu2 %v120_v27  ;;  %v144_v55 = vadd.f32 %v178_v42, %v143_v50 }
 0x1c3   :  { %v148_v58 = vsel %vm147_vm4, %v178_v42, %v144_v55 }
 0x1c4   :  { %v153_v61 = vsel %vm150_vm5, %v152_v57, %v148_v58 }
 0x22c   :  { %v114_v46 = vpop.xlane.xlu2 %113 }
 0x22d   :  { %v115_v47 = vadd.f32 %v114_v46, %v112_v45 }
 0x22f   :  { %117 = vst.msk [vmem:[#allocation3] sm:$0xff] %vm40_vm0, %v115_v47 }
 0x234   :  { %v122_v51 = vpop.xlane.xlu2 %121 }
 0x235   :  { %v123_v52 = vadd.f32 %v122_v51, %v119_v49 }
 0x236   :  { %v134_v54 = vld [vmem:[#allocation3] sm:$0xff] }
 0x237   :  { %179 = vlog2.f32 %v134_v54  ;;  %124 = vst.msk [vmem:[#allocation4] sm:$0xff] %vm40_vm0, %v123_v52 }
 0x23d   :  { %v180_v59 = vpop.eup %179 }
 0x23e   :  { %v136_v60 = vmul.f32 0.6931472, %v180_v59  ;;  %v138_v62 = vld [vmem:[#allocation4] sm:$0xff] }
 0x23f   :  { %v154_v0 = vmul.f32 %v153_v61, %v138_v62 }
 0x240   :  { %v137_v1 = vadd.f32 %v136_v60, %v133_v63 }
 0x242   :  { %v155_v2 = vsub.f32 %v137_v1, %v154_v0 }
 0x244   :  { %156 = vst.msk [vmem:[%s275_s5] sm:$0xff] %vm40_vm0, %v155_v2 }
 0x245   :  { %161 = vsyncpa [#allocation7], 1 }

</bundles_post_ra>
